<compile_context>
chip_gen: v7x
topology: tpu7x:2x2x1
jax: 0.10.0
libtpu: 0.0.40
codegen_flags: <defaults>
</compile_context>

<pallas_src>
import functools

import jax
import jax.numpy as jnp
from jax import lax
from jax.experimental import pallas as pl
from jax.experimental.pallas import tpu as pltpu


def _my_layernorm_kernel_fused(x_ref, gamma_ref, beta_ref, o_ref, *, eps):
    # x_ref: (Bt, L, D)   gamma_ref/beta_ref: (1, D)   o_ref: (Bt, L, D)
    x = x_ref[...].astype(jnp.float32)                     # (Bt, L, D)

    # LayerNorm over the channel (lane) dim D.
    mu = jnp.mean(x, axis=-1, keepdims=True)               # (Bt, L, 1)
    xc = x - mu
    var = jnp.mean(xc * xc, axis=-1, keepdims=True)        # (Bt, L, 1)
    rstd = lax.rsqrt(var + eps)                            # EUP
    gamma = gamma_ref[...].astype(jnp.float32)             # (1, D)
    beta = beta_ref[...].astype(jnp.float32)               # (1, D)
    x_hat = xc * rstd * gamma + beta                       # (Bt, L, D)

    # Subtract per-(batch, channel) mean over the sequence dim L.
    bias = jnp.mean(x_hat, axis=1, keepdims=True)          # (Bt, 1, D)
    o_ref[...] = (x_hat - bias).astype(o_ref.dtype)


def _my_layernorm_kernel_chunked(x_ref, gamma_ref, beta_ref, o_ref, acc_ref,
                                 *, eps, chunk):
    # Two-pass, L-chunked variant: same HBM traffic (x stays resident in the
    # (Bt, L, D) input block), but fp32 temps are only O(Bt * chunk * D), which
    # keeps v7x's smaller VMEM happy and bounds vreg live ranges.
    Bt, L, D = x_ref.shape
    n_chunks = L // chunk
    gamma = gamma_ref[...].astype(jnp.float32)             # (1, D)
    beta = beta_ref[...].astype(jnp.float32)                # (1, D)

    def x_hat_chunk(c):
        start = pl.multiple_of(c * chunk, chunk)
        x = x_ref[:, pl.ds(start, chunk), :].astype(jnp.float32)   # (Bt, chunk, D)
        mu = jnp.mean(x, axis=-1, keepdims=True)
        xc = x - mu
        var = jnp.mean(xc * xc, axis=-1, keepdims=True)
        rstd = lax.rsqrt(var + eps)
        return start, xc * rstd * gamma + beta                       # (Bt, chunk, D)

    # Pass 1: accumulate sum over L of x_hat.
    acc_ref[...] = jnp.zeros_like(acc_ref)

    def body1(c, carry):
        _, xh = x_hat_chunk(c)
        acc_ref[...] += jnp.sum(xh, axis=1)                 # (Bt, D)
        return carry

    unroll = n_chunks <= 8
    lax.fori_loop(0, n_chunks, body1, 0, unroll=unroll)

    bias = acc_ref[...] * (1.0 / L)                         # (Bt, D)

    # Pass 2: recompute x_hat per chunk (cheap VPU work, hidden under DMA) and
    # write the debiased result.
    def body2(c, carry):
        start, xh = x_hat_chunk(c)
        o_ref[:, pl.ds(start, chunk), :] = (xh - bias[:, None, :]).astype(o_ref.dtype)
        return carry

    lax.fori_loop(0, n_chunks, body2, 0, unroll=unroll)


def my_layernorm(x, gamma, beta, *, eps=1e-5, block_batch=None, chunk=None,
                 force_chunked=False):
    """x: (B, L, D); gamma, beta: (D,).  Returns (B, L, D)."""
    B, L, D = x.shape
    gamma2 = jnp.asarray(gamma).reshape(1, D)
    beta2 = jnp.asarray(beta).reshape(1, D)
    itemsize = x.dtype.itemsize

    # --- choose how many batch elements per grid step (~2 MiB input tiles) ---
    if block_batch is None:
        target_tile_bytes = 2 << 20
        per_batch_bytes = L * D * itemsize
        cap = int(max(1, min(B, target_tile_bytes // max(per_batch_bytes, 1))))
        Bt = max(d for d in range(1, cap + 1) if B % d == 0)
    else:
        Bt = int(block_batch)
        assert B % Bt == 0, "block_batch must divide B"

    # --- choose fused vs. L-chunked two-pass path ---
    min_sublane = 8 if itemsize >= 4 else 16   # bf16 packs 16 rows / sublane tile
    if chunk is None:
        candidates = [c for c in (1024, 512, 256, 128, 64, 32, 16, 8)
                      if c >= min_sublane and L % c == 0]
        chunk = candidates[0] if candidates else None
    want_chunked = force_chunked or (Bt * L * D * 4 > (4 << 20))
    use_chunked = want_chunked and (chunk is not None) and (L % chunk == 0)
    # TODO(synk): if L has no sublane-aligned divisor, add a masked tail chunk
    # instead of falling back to the whole-slab path.

    # --- explicit VMEM budget from the real footprint ---
    tile_elems = Bt * L * D
    io_bytes = 4 * tile_elems * itemsize               # double-buffered in + out
    if use_chunked:
        temp_bytes = 6 * Bt * chunk * D * 4 + Bt * D * 4
    else:
        temp_bytes = 4 * tile_elems * 4                 # fp32 upcast / x_hat temps
    vmem_limit = int(min(max(io_bytes + temp_bytes + (2 << 20), 4 << 20), 64 << 20))

    if use_chunked:
        kernel = functools.partial(_my_layernorm_kernel_chunked, eps=eps, chunk=chunk)
        scratch_shapes = [pltpu.VMEM((Bt, D), jnp.float32)]
    else:
        kernel = functools.partial(_my_layernorm_kernel_fused, eps=eps)
        scratch_shapes = []

    return pl.pallas_call(
        kernel,
        out_shape=jax.ShapeDtypeStruct((B, L, D), x.dtype),
        grid_spec=pltpu.PrefetchScalarGridSpec(
            num_scalar_prefetch=0,
            grid=(B // Bt,),
            in_specs=[
                pl.BlockSpec((Bt, L, D), lambda b: (b, 0, 0)),   # x slab
                pl.BlockSpec((1, D), lambda b: (0, 0)),          # gamma (shared)
                pl.BlockSpec((1, D), lambda b: (0, 0)),          # beta  (shared)
            ],
            out_specs=pl.BlockSpec((Bt, L, D), lambda b: (b, 0, 0)),
            scratch_shapes=scratch_shapes,
        ),
        compiler_params=pltpu.CompilerParams(
            dimension_semantics=("parallel",),
            vmem_limit_bytes=vmem_limit,
        ),
    )(x, gamma2, beta2)


def _reference(x, gamma, beta, eps=1e-5):
    # Pure-JAX reference matching PyTorch semantics (biased var, eps inside sqrt).
    x = x.astype(jnp.float32)
    mu = jnp.mean(x, axis=-1, keepdims=True)
    var = jnp.mean((x - mu) ** 2, axis=-1, keepdims=True)
    x_hat = (x - mu) / jnp.sqrt(var + eps) * gamma + beta
    bias = jnp.mean(x_hat, axis=1, keepdims=True)
    return x_hat - bias


if __name__ == "__main__":
    B, L, D = 2, 16, 128   # batch, seq-len, channels (lane-dense: multiple of 128)

    key = jax.random.PRNGKey(0)
    kx, kg, kb = jax.random.split(key, 3)
    x = jax.random.normal(kx, (B, L, D), dtype=jnp.float32)
    # Non-trivial LayerNorm params (PyTorch default init would be ones/zeros).
    gamma = 1.0 + 0.1 * jax.random.normal(kg, (D,), dtype=jnp.float32)
    beta = 0.1 * jax.random.normal(kb, (D,), dtype=jnp.float32)

    out_ref = _reference(x, gamma, beta)

    # Default (fused, batch-blocked) path.
    out = jax.block_until_ready(my_layernorm(x, gamma, beta))
    assert out.shape == (B, L, D)
    err = float(jnp.max(jnp.abs(out - out_ref)))
    assert jnp.allclose(out, out_ref, atol=1e-5, rtol=1e-5), err

    # Also exercise the L-chunked two-pass path (auto-selected for large L*D).
    out_chunked = jax.block_until_ready(
        my_layernorm(x, gamma, beta, force_chunked=True, chunk=8))
    err_c = float(jnp.max(jnp.abs(out_chunked - out_ref)))
    assert jnp.allclose(out_chunked, out_ref, atol=1e-5, rtol=1e-5), err_c

    print("KERNEL_OK")
</pallas_src>

<mosaic_0001>
module attributes {stable_mosaic.version = 11 : i64} {
  func.func @_my_layernorm_kernel_fused(%arg0: i32, %arg1: memref<2x16x128xf32, #tpu.memory_space<vmem>>, %arg2: memref<1x128xf32, #tpu.memory_space<vmem>>, %arg3: memref<1x128xf32, #tpu.memory_space<vmem>>, %arg4: memref<2x16x128xf32, #tpu.memory_space<vmem>>) attributes {dimension_semantics = [#tpu.dimension_semantics<parallel>], iteration_bounds = array<i64: 1>, scalar_prefetch = 0 : i64, scratch_operands = 0 : i64, tpu.core_type = #tpu.core_type<tc>, window_params = [{transform_indices = @transform_0, window_bounds = array<i64: 2, 16, 128>}, {pipeline_mode = #tpu.pipeline_mode<synchronous>, transform_indices = @transform_1, window_bounds = array<i64: 1, 128>}, {pipeline_mode = #tpu.pipeline_mode<synchronous>, transform_indices = @transform_2, window_bounds = array<i64: 1, 128>}, {transform_indices = @transform_3, window_bounds = array<i64: 2, 16, 128>}]} {
    %c0 = arith.constant 0 : index
    %c0_0 = arith.constant 0 : index
    %c0_1 = arith.constant 0 : index
    %0 = vector.load %arg1[%c0, %c0_0, %c0_1] : memref<2x16x128xf32, #tpu.memory_space<vmem>>, vector<2x16x128xf32>
    %cst = arith.constant dense<0.000000e+00> : vector<2x16xf32>
    %1 = vector.multi_reduction <add>, %0, %cst [2] : vector<2x16x128xf32> to vector<2x16xf32>
    %2 = vector.shape_cast %1 : vector<2x16xf32> to vector<2x16x1xf32>
    %cst_2 = arith.constant 1.280000e+02 : f32
    %3 = vector.broadcast %cst_2 : f32 to vector<2x16x1xf32>
    %4 = arith.divf %2, %3 : vector<2x16x1xf32>
    %5 = vector.broadcast %4 : vector<2x16x1xf32> to vector<2x16x128xf32>
    %6 = arith.subf %0, %5 : vector<2x16x128xf32>
    %7 = arith.mulf %6, %6 : vector<2x16x128xf32>
    %cst_3 = arith.constant dense<0.000000e+00> : vector<2x16xf32>
    %8 = vector.multi_reduction <add>, %7, %cst_3 [2] : vector<2x16x128xf32> to vector<2x16xf32>
    %9 = vector.shape_cast %8 : vector<2x16xf32> to vector<2x16x1xf32>
    %cst_4 = arith.constant 1.280000e+02 : f32
    %10 = vector.broadcast %cst_4 : f32 to vector<2x16x1xf32>
    %11 = arith.divf %9, %10 : vector<2x16x1xf32>
    %cst_5 = arith.constant 9.99999974E-6 : f32
    %12 = vector.broadcast %cst_5 : f32 to vector<2x16x1xf32>
    %13 = arith.addf %11, %12 : vector<2x16x1xf32>
    %14 = math.rsqrt %13 : vector<2x16x1xf32>
    %c0_6 = arith.constant 0 : index
    %c0_7 = arith.constant 0 : index
    %15 = vector.load %arg2[%c0_6, %c0_7] : memref<1x128xf32, #tpu.memory_space<vmem>>, vector<1x128xf32>
    %c0_8 = arith.constant 0 : index
    %c0_9 = arith.constant 0 : index
    %16 = vector.load %arg3[%c0_8, %c0_9] : memref<1x128xf32, #tpu.memory_space<vmem>>, vector<1x128xf32>
    %17 = vector.broadcast %14 : vector<2x16x1xf32> to vector<2x16x128xf32>
    %18 = arith.mulf %6, %17 : vector<2x16x128xf32>
    %19 = vector.shape_cast %15 : vector<1x128xf32> to vector<1x1x128xf32>
    %20 = vector.broadcast %19 : vector<1x1x128xf32> to vector<2x16x128xf32>
    %21 = arith.mulf %18, %20 : vector<2x16x128xf32>
    %22 = vector.shape_cast %16 : vector<1x128xf32> to vector<1x1x128xf32>
    %23 = vector.broadcast %22 : vector<1x1x128xf32> to vector<2x16x128xf32>
    %24 = arith.addf %21, %23 : vector<2x16x128xf32>
    %cst_10 = arith.constant dense<0.000000e+00> : vector<2x128xf32>
    %25 = vector.multi_reduction <add>, %24, %cst_10 [1] : vector<2x16x128xf32> to vector<2x128xf32>
    %26 = vector.shape_cast %25 : vector<2x128xf32> to vector<2x1x128xf32>
    %cst_11 = arith.constant 1.600000e+01 : f32
    %27 = vector.broadcast %cst_11 : f32 to vector<2x1x128xf32>
    %28 = arith.divf %26, %27 : vector<2x1x128xf32>
    %29 = vector.broadcast %28 : vector<2x1x128xf32> to vector<2x16x128xf32>
    %30 = arith.subf %24, %29 : vector<2x16x128xf32>
    %c0_12 = arith.constant 0 : index
    %c0_13 = arith.constant 0 : index
    %c0_14 = arith.constant 0 : index
    %31 = vector.load %arg4[%c0_12, %c0_13, %c0_14] : memref<2x16x128xf32, #tpu.memory_space<vmem>>, vector<2x16x128xf32>
    tpu.vector_store %arg4[%c0_12, %c0_13, %c0_14], %30 {strides = array<i32>} : memref<2x16x128xf32, #tpu.memory_space<vmem>>, vector<2x16x128xf32>,
    return
  }
  func.func @transform_0(%arg0: i32) -> (i32, i32, i32) {
    %c0_i32 = arith.constant 0 : i32
    %c0_i32_0 = arith.constant 0 : i32
    %c0_i32_1 = arith.constant 0 : i32
    return %arg0, %c0_i32, %c0_i32_0 : i32, i32, i32
  }
  func.func @transform_1(%arg0: i32) -> (i32, i32) {
    %c0_i32 = arith.constant 0 : i32
    %c0_i32_0 = arith.constant 0 : i32
    %c0_i32_1 = arith.constant 0 : i32
    return %c0_i32, %c0_i32_0 : i32, i32
  }
  func.func @transform_2(%arg0: i32) -> (i32, i32) {
    %c0_i32 = arith.constant 0 : i32
    %c0_i32_0 = arith.constant 0 : i32
    %c0_i32_1 = arith.constant 0 : i32
    return %c0_i32, %c0_i32_0 : i32, i32
  }
  func.func @transform_3(%arg0: i32) -> (i32, i32, i32) {
    %c0_i32 = arith.constant 0 : i32
    %c0_i32_0 = arith.constant 0 : i32
    %c0_i32_1 = arith.constant 0 : i32
    return %arg0, %c0_i32, %c0_i32_0 : i32, i32, i32
  }
}

</mosaic_0001>

<bundles_post_ra>
// kernel: tpu_custom_call.1
= control target key start
LH: loop header
LB: loop body
LE: loop exit
PB: predicated region body
PF: predicated region fallthrough
CT: control target
= control target key end

     0   :  { %8 = vsyncpa [#allocation3], 0  ;;  %s264_s0 = inlined_call_operand.hbm [shape: f32[2,16,128], index: 0, kind: input, shape index: {}]   ;;  %s265_s1 = inlined_call_operand.vmem [shape: f32[1,128], index: 1, kind: input, shape index: {}]   ;;  %s266_s2 = inlined_call_operand.vmem [shape: f32[1,128], index: 2, kind: input, shape index: {}]   ;;  %s267_s3 = inlined_call_operand.hbm [shape: f32[2,16,128], index: 3, kind: output, shape index: {}]  }
   0x1   :  { %9 = vsyncpa [#allocation4], 0  ;;  %s204_s12 = smov [#allocation2]   ;;  %s156_s16 = scalar_lea.hbm %s264_s0, 512 }
   0x2   :  { %s15_s13 = sshll.u32 %s204_s12, 4  ;;  %p157_p0 = scmp.ne.s32.totalorder %s264_s0, %s156_s16  ;;  %s16_s13 = int_to_ptr.vmem [resolvable:$true] %s15_s13 }
   0x3   :  { %p160_p1 = scmp.lt.u32.totalorder %s156_s16, %s264_s0 }
   0x5   :  { %p162_p2 = pnand %p160_p1, %p157_p0 }
   0x7   :  { %165 = shalt.err (!%p162_p2)
}
   0x8   :  { %s166_s21 = scalar_lea.vmem %s16_s13, 512  ;;  %p171_p4 = scmp.lt.s32.totalorder %s16_s13, %s16_s13 }
   0x9   :  { %p167_p3 = scmp.ne.s32.totalorder %s16_s13, %s166_s21  ;;  %p172_p5 = scmp.lt.s32.totalorder %s166_s21, %s166_s21 }
   0xb   :  { %p173_p6 = por %p172_p5, %p171_p4 }
   0xd   :  { %p174_p7 = pnand %p173_p6, %p167_p3 }
   0xf   :  { %177 = shalt.err (!%p174_p7)
}
  0x10   :  { %s205_s22 = smov 128   ;;  %s206_s23 = smov 8  }
  0x11   :  { %21 = dma.hbm_to_vmem [thread:$0]  %s264_s0, 512, %s16_s13, [#allocation3], %s205_s22, %s205_s22, %s206_s23  }
  0x12   :  { %200 = dma.done.wait [#allocation3], 512  }
  0x13   :  { %201 = vsyncadd [#allocation3], 4294966784  ;;  %v29_v0 = vld [vmem:[#allocation2] sm:$0xff]  ;;  %v31_v1 = vld [vmem:[#allocation2 + $0x10] sm:$0xff] }
  0x14   :  { %33 = vadd.xlane.f32.xlu0 %v29_v0  ;;  %37 = vadd.xlane.f32.xlu1 %v31_v1  ;;  %v30_v2 = vld [vmem:[#allocation2 + $0x8] sm:$0xff]  ;;  %v32_v3 = vld [vmem:[#allocation2 + $0x18] sm:$0xff]  ;;  %v142_v34 = vld [vmem:[%s265_s1] ss:$0 sm:$0xff]  ;;  %s207_s1 = smov [#allocation5]  }
  0x15   :  { %v143_v40 = vld [vmem:[%s266_s2] ss:$0 sm:$0xff]  ;;  %s130_s2 = sshll.u32 %s207_s1, 4  ;;  %s131_s2 = int_to_ptr.vmem [resolvable:$true] %s130_s2 }
  0x16   :  { %s178_s29 = scalar_lea.vmem %s131_s2, 512  ;;  %p183_p9 = scmp.lt.s32.totalorder %s131_s2, %s131_s2 }
  0x17   :  { %p179_p8 = scmp.ne.s32.totalorder %s131_s2, %s178_s29  ;;  %p184_p10 = scmp.lt.s32.totalorder %s178_s29, %s178_s29 }
  0x18   :  { %35 = vadd.xlane.f32.xlu0 %v30_v2  ;;  %39 = vadd.xlane.f32.xlu1 %v32_v3 }
  0x19   :  { %p185_p11 = por %p184_p10, %p183_p9 }
  0x1b   :  { %p186_p12 = pnand %p185_p11, %p179_p8 }
  0xa1   :  { %v34_v4 = vpop.xlane.xlu0 %33  ;;  %v38_v5 = vpop.xlane.xlu1 %37 }
  0xa2   :  { %v42_v6 = vmul.f32 0.0078125, %v34_v4  ;;  %v44_v7 = vmul.f32 0.0078125, %v38_v5 }
  0xa4   :  { %v46_v8 = vsub.f32 %v29_v0, %v42_v6  ;;  %v48_v9 = vsub.f32 %v31_v1, %v44_v7 }
  0xa5   :  { %v36_v10 = vpop.xlane.xlu0 %35  ;;  %v40_v11 = vpop.xlane.xlu1 %39 }
  0xa6   :  { %v43_v12 = vmul.f32 0.0078125, %v36_v10  ;;  %v50_v13 = vmul.f32 %v46_v8, %v46_v8  ;;  %v45_v14 = vmul.f32 0.0078125, %v40_v11  ;;  %v52_v17 = vmul.f32 %v48_v9, %v48_v9 }
  0xa8   :  { %v47_v15 = vsub.f32 %v30_v2, %v43_v12  ;;  %54 = vadd.xlane.f32.xlu0 %v50_v13  ;;  %v49_v16 = vsub.f32 %v32_v3, %v45_v14 }
  0xaa   :  { %v51_v18 = vmul.f32 %v47_v15, %v47_v15  ;;  %v53_v19 = vmul.f32 %v49_v16, %v49_v16 }
  0xac   :  { %58 = vadd.xlane.f32.xlu0 %v52_v17  ;;  %56 = vadd.xlane.f32.xlu1 %v51_v18 }
  0xb0   :  { %60 = vadd.xlane.f32.xlu1 %v53_v19 }
 0x135   :  { %v55_v20 = vpop.xlane.xlu0 %54 }
 0x136   :  { %v62_v21 = vmul.f32 0.0078125, %v55_v20 }
 0x138   :  { %v66_v22 = vadd.f32 1e-05, %v62_v21 }
 0x139   :  { %v57_v23 = vpop.xlane.xlu1 %56  ;;  %v59_v24 = vpop.xlane.xlu0 %58 }
 0x13a   :  { %148 = vrsqrt.f32 %v66_v22  ;;  %v63_v25 = vmul.f32 0.0078125, %v57_v23  ;;  %v64_v26 = vmul.f32 0.0078125, %v59_v24 }
 0x13c   :  { %v67_v27 = vadd.f32 1e-05, %v63_v25  ;;  %v68_v28 = vadd.f32 1e-05, %v64_v26 }
 0x13d   :  { %v61_v29 = vpop.xlane.xlu1 %60 }
 0x13e   :  { %150 = vrsqrt.f32 %v67_v27  ;;  %v65_v30 = vmul.f32 0.0078125, %v61_v29 }
 0x13f   :  { %152 = vrsqrt.f32 %v68_v28 }
 0x140   :  { %v69_v31 = vadd.f32 1e-05, %v65_v30 }
 0x142   :  { %154 = vrsqrt.f32 %v69_v31 }
 0x144   :  { %v149_v32 = vpop.eup %148 }
 0x145   :  { %v76_v33 = vmul.f32 %v149_v32, %v46_v8 }
 0x147   :  { %v86_v38 = vmul.f32 %v142_v34, %v76_v33 }
 0x148   :  { %v151_v35 = vpop.eup %150 }
 0x149   :  { %v153_v36 = vpop.eup %152  ;;  %v77_v37 = vmul.f32 %v151_v35, %v47_v15  ;;  %v96_v45 = vadd.f32 %v143_v40, %v86_v38 }
 0x14a   :  { %v78_v39 = vmul.f32 %v153_v36, %v48_v9 }
 0x14b   :  { %v87_v41 = vmul.f32 %v142_v34, %v77_v37 }
 0x14c   :  { %v155_v42 = vpop.eup %154  ;;  %v88_v43 = vmul.f32 %v142_v34, %v78_v39 }
 0x14d   :  { %v79_v44 = vmul.f32 %v155_v42, %v49_v16  ;;  %v97_v46 = vadd.f32 %v143_v40, %v87_v41 }
 0x14e   :  { %v98_v49 = vadd.f32 %v143_v40, %v88_v43 }
 0x14f   :  { %v89_v47 = vmul.f32 %v142_v34, %v79_v44  ;;  %v100_v48 = vadd.f32 %v97_v46, %v96_v45 }
 0x151   :  { %v99_v50 = vadd.f32 %v143_v40, %v89_v47  ;;  %v101_v51 = vrot.slane %v100_v48, 4 }
 0x153   :  { %v102_v52 = vadd.f32 %v101_v51, %v100_v48  ;;  %v107_v53 = vadd.f32 %v99_v50, %v98_v49 }
 0x155   :  { %v103_v54 = vrot.slane %v102_v52, 2  ;;  %v108_v55 = vrot.slane %v107_v53, 4 }
 0x157   :  { %v104_v56 = vadd.f32 %v103_v54, %v102_v52  ;;  %v109_v57 = vadd.f32 %v108_v55, %v107_v53 }
 0x159   :  { %v105_v58 = vrot.slane %v104_v56, 1  ;;  %v110_v59 = vrot.slane %v109_v57, 2 }
 0x15b   :  { %v106_v60 = vadd.f32 %v105_v58, %v104_v56  ;;  %v111_v61 = vadd.f32 %v110_v59, %v109_v57 }
 0x15d   :  { %v112_v62 = vrot.slane %v111_v61, 1  ;;  %v115_v63 = vmul.f32 0.0625, %v106_v60 }
 0x15f   :  { %v113_v0 = vadd.f32 %v112_v62, %v111_v61  ;;  %v117_v1 = vsub.f32 %v96_v45, %v115_v63  ;;  %v118_v2 = vsub.f32 %v97_v46, %v115_v63 }
 0x161   :  { %v116_v3 = vmul.f32 0.0625, %v113_v0  ;;  %121 = vst [vmem:[#allocation5] sm:$0xff] %v117_v1  ;;  %122 = vst [vmem:[#allocation5 + $0x8] sm:$0xff] %v118_v2 }
 0x163   :  { %v119_v4 = vsub.f32 %v98_v49, %v116_v3  ;;  %v120_v5 = vsub.f32 %v99_v50, %v116_v3 }
 0x165   :  { %123 = vst [vmem:[#allocation5 + $0x10] sm:$0xff] %v119_v4  ;;  %124 = vst [vmem:[#allocation5 + $0x18] sm:$0xff] %v120_v5 }
 0x166   :  { %189 = shalt.err (!%p186_p12)
}
 0x167   :  { %s190_s5 = scalar_lea.hbm %s267_s3, 512 }
 0x168   :  { %p191_p13 = scmp.ne.s32.totalorder %s267_s3, %s190_s5  ;;  %p194_p0 = scmp.lt.u32.totalorder %s190_s5, %s267_s3 }
 0x16a   :  { %p196_p1 = pnand %p194_p0, %p191_p13 }
 0x16c   :  { %199 = shalt.err (!%p196_p1)
}
 0x16d   :  { %136 = dma.vmem_to_hbm [thread:$0]  %s131_s2, 512, %s267_s3, [#allocation4], %s205_s22, %s205_s22, %s206_s23  }
 0x16e   :  { %202 = dma.done.wait [#allocation4], 512  }
 0x16f   :  { %203 = vsyncadd [#allocation4], 4294966784 }
 0x170   :  { %140 = vsyncpa [#allocation3], 1 }
 0x171   :  { %141 = vsyncpa [#allocation4], 1 }

</bundles_post_ra>
